<compile_context>
chip_gen: v5e
topology: v5e:2x2
jax: 0.10.0
libtpu: 0.0.40
codegen_flags: <defaults>
</compile_context>

<pallas_src>
import functools

import jax
import jax.numpy as jnp
from jax.experimental import pallas as pl
from jax.experimental.pallas import tpu as pltpu


def _round_up(x, m):
    return ((x + m - 1) // m) * m


def _cdiv(a, b):
    return -(-a // b)


def _num_tensorcores():
    """Best-effort count of TensorCores per device (megacore sharding target)."""
    try:
        d = jax.devices()[0]
        n = getattr(d, "num_cores", None)
        if n is None:
            n = getattr(pltpu.get_tpu_info(), "num_cores", 1)
        return max(1, int(n))
    except Exception:
        return 1


def _select_tile(B, num_cores, max_tb=2048):
    """Pick (TB, B_pad) so TB divides B_pad and padding is minimal.

    - small/medium B: one grid step (TB = round_up(B, 8)).
    - multi-TC chips with large B: exactly two balanced steps (both cores busy).
    - very large B: tile at <= max_tb rows, still dividing B_pad.
    """
    B8 = _round_up(B, 8)
    if num_cores >= 2 and B8 >= 512:
        TB = _round_up(_cdiv(B8, 2), 8)
        return TB, 2 * TB
    if B8 <= max_tb:
        return B8, B8
    steps = _cdiv(B8, max_tb)
    TB = _round_up(_cdiv(B8, steps), 8)
    return TB, TB * steps


def actor_critic_kernel(x_ref, w_cat_ref, b_cat_ref, w_head_ref, b_head_ref,
                        out_ref):
    x = x_ref[...]                                               # [TB, D]

    # Fused trunk: relu(x @ [W_pi1 | W_v1] + [b_pi1 | b_v1])  -> [TB, 2H] (f32 acc)
    h = jnp.dot(x, w_cat_ref[...],
                preferred_element_type=jnp.float32) + b_cat_ref[...]
    h = jnp.maximum(h, 0.0).astype(w_head_ref.dtype)

    # Fused heads: block-diagonal [2H, 128] weight.
    #   rows 0:H   -> cols 0:A      (actor logits)
    #   rows H:2H  -> col  A        (critic value)
    # Single lane-dense [TB, 128] store.
    y = jnp.dot(h, w_head_ref[...],
                preferred_element_type=jnp.float32) + b_head_ref[...]
    out_ref[...] = y.astype(out_ref.dtype)


def pack_params(params, n_actions, compute_dtype=jnp.float32):
    """Pack per-layer parameters into fused kernel operands (done once)."""
    D, H = params["w_pi1"].shape
    A = n_actions
    out_lanes = max(128, _round_up(A + 1, 128))

    w_cat = jnp.concatenate([params["w_pi1"], params["w_v1"]], axis=1)   # [D, 2H]
    b_cat = jnp.concatenate([params["b_pi1"], params["b_v1"]], axis=1)   # [1, 2H]

    w_head = jnp.zeros((2 * H, out_lanes), jnp.float32)
    w_head = w_head.at[:H, :A].set(params["w_pi"])
    w_head = w_head.at[H:, A:A + 1].set(params["w_v"])

    b_head = jnp.zeros((1, out_lanes), jnp.float32)
    b_head = b_head.at[:, :A].set(params["b_pi"])
    b_head = b_head.at[:, A:A + 1].set(params["b_v"])

    return {
        # matmul operands in compute dtype; biases stay f32 (added on f32 acc)
        "w_cat": w_cat.astype(compute_dtype),
        "b_cat": b_cat.astype(jnp.float32),
        "w_head": w_head.astype(compute_dtype),
        "b_head": b_head.astype(jnp.float32),
        "n_actions": int(A),
        "input_dims": int(D),
        "compute_dtype": compute_dtype,
    }


def actor_critic_forward(state, packed, *, max_tb=2048):
    """state: [B, D] float32 (or bf16). packed: output of pack_params."""
    B, D = state.shape
    w_cat, b_cat = packed["w_cat"], packed["b_cat"]
    w_head, b_head = packed["w_head"], packed["b_head"]
    H2 = w_cat.shape[1]
    OUT = w_head.shape[1]
    A = packed["n_actions"]
    cdt = packed["compute_dtype"]
    itemsize = jnp.dtype(cdt).itemsize

    TB, B_pad = _select_tile(B, _num_tensorcores(), max_tb=max_tb)

    x = state.astype(cdt)
    if B_pad != B:
        x = jnp.pad(x, ((0, B_pad - B), (0, 0)))

    cost = pl.CostEstimate(
        flops=2 * B_pad * (D * H2 + H2 * OUT),
        transcendentals=0,
        bytes_accessed=(B_pad * (D + OUT) * itemsize
                        + (D * H2 + H2 * OUT) * itemsize
                        + (H2 + OUT) * 4),
    )

    out = pl.pallas_call(
        actor_critic_kernel,
        out_shape=jax.ShapeDtypeStruct((B_pad, OUT), cdt),
        grid=(B_pad // TB,),
        in_specs=[
            pl.BlockSpec((TB, D), lambda i: (i, 0)),     # x: tiled over batch
            pl.BlockSpec((D, H2), lambda i: (0, 0)),     # W_cat: resident
            pl.BlockSpec((1, H2), lambda i: (0, 0)),     # b_cat: resident
            pl.BlockSpec((H2, OUT), lambda i: (0, 0)),   # W_head: resident
            pl.BlockSpec((1, OUT), lambda i: (0, 0)),    # b_head: resident
        ],
        out_specs=pl.BlockSpec((TB, OUT), lambda i: (i, 0)),
        compiler_params=pltpu.CompilerParams(
            dimension_semantics=("parallel",)),          # both TCs when grid==2
        cost_estimate=cost,
    )(x, w_cat, b_cat, w_head, b_head)

    pi = out[:B, :A]
    v = out[:B, A:A + 1]
    return pi, v


def xavier_normal(key, fan_in, fan_out):
    # nn.init.xavier_normal_ : std = sqrt(2 / (fan_in + fan_out))
    std = jnp.sqrt(2.0 / (fan_in + fan_out))
    # PyTorch weight shape is (out, in); we store the transpose (in, out).
    return (std * jax.random.normal(key, (fan_in, fan_out))).astype(jnp.float32)


def init_params(key, input_dims, n_actions, hidden=128):
    k1, k2, k3, k4 = jax.random.split(key, 4)
    return {
        "w_pi1": xavier_normal(k1, input_dims, hidden),
        "b_pi1": jnp.zeros((1, hidden), jnp.float32),
        "w_v1": xavier_normal(k2, input_dims, hidden),
        "b_v1": jnp.zeros((1, hidden), jnp.float32),
        "w_pi": xavier_normal(k3, hidden, n_actions),
        "b_pi": jnp.zeros((1, n_actions), jnp.float32),
        "w_v": xavier_normal(k4, hidden, 1),
        "b_v": jnp.zeros((1, 1), jnp.float32),
    }


def reference_forward(state, params):
    h_pi = jnp.maximum(state @ params["w_pi1"] + params["b_pi1"], 0.0)
    h_v = jnp.maximum(state @ params["w_v1"] + params["b_v1"], 0.0)
    pi = h_pi @ params["w_pi"] + params["b_pi"]
    v = h_v @ params["w_v"] + params["b_v"]
    return pi, v


# TODO(synk): remember/clear_memory/calc_R/loss_func/choose_action are host-side
# RL bookkeeping / sampling (Python lists, Categorical) and are not kernel work;
# only the nn forward pass is implemented as a Pallas kernel.

if __name__ == "__main__":
    # Small shapes consistent with the module (CartPole-ish dims).
    B = 8            # per-step batch (choose_action-sized)
    INPUT_DIMS = 8   # observation dimension
    N_ACTIONS = 4
    HIDDEN = 128

    key = jax.random.PRNGKey(0)
    kp, kx, kx2 = jax.random.split(key, 3)
    params = init_params(kp, INPUT_DIMS, N_ACTIONS, HIDDEN)

    # --- Case 1: latency path, f32 parity check (single grid step, jitted end-to-end)
    packed_f32 = pack_params(params, N_ACTIONS, compute_dtype=jnp.float32)
    fwd_f32 = jax.jit(functools.partial(actor_critic_forward, packed=packed_f32))

    state = jax.random.normal(kx, (B, INPUT_DIMS), dtype=jnp.float32)
    pi, v = jax.block_until_ready(fwd_f32(state))
    pi_ref, v_ref = reference_forward(state, params)
    assert pi.shape == (B, N_ACTIONS) and v.shape == (B, 1)
    assert jnp.allclose(pi, pi_ref, atol=1e-5, rtol=1e-5)
    assert jnp.allclose(v, v_ref, atol=1e-5, rtol=1e-5)

    # --- Case 2: rollout batch (non-multiple of 8), bf16 operands/output.
    # TB = round_up(300, 8) = 304 -> single grid step, only 4 padded rows.
    packed_bf16 = pack_params(params, N_ACTIONS, compute_dtype=jnp.bfloat16)
    fwd_bf16 = jax.jit(functools.partial(actor_critic_forward, packed=packed_bf16))

    B2 = 300
    state2 = jax.random.normal(kx2, (B2, INPUT_DIMS), dtype=jnp.float32)
    pi2, v2 = jax.block_until_ready(fwd_bf16(state2))
    pi2_ref, v2_ref = reference_forward(state2, params)
    assert pi2.shape == (B2, N_ACTIONS) and v2.shape == (B2, 1)
    assert jnp.allclose(pi2.astype(jnp.float32), pi2_ref, atol=5e-2, rtol=5e-2)
    assert jnp.allclose(v2.astype(jnp.float32), v2_ref, atol=5e-2, rtol=5e-2)

    print("KERNEL_OK")
</pallas_src>

<mosaic_0001>
module attributes {stable_mosaic.version = 11 : i64} {
  func.func @actor_critic_kernel(%arg0: i32, %arg1: memref<8x8xf32, #tpu.memory_space<vmem>>, %arg2: memref<8x256xf32, #tpu.memory_space<vmem>>, %arg3: memref<1x256xf32, #tpu.memory_space<vmem>>, %arg4: memref<256x128xf32, #tpu.memory_space<vmem>>, %arg5: memref<1x128xf32, #tpu.memory_space<vmem>>, %arg6: memref<8x128xf32, #tpu.memory_space<vmem>>) attributes {dimension_semantics = [#tpu.dimension_semantics<parallel>], iteration_bounds = array<i64: 1>, scalar_prefetch = 0 : i64, scratch_operands = 0 : i64, tpu.core_type = #tpu.core_type<tc>, window_params = [{transform_indices = @transform_0, window_bounds = array<i64: 8, 8>}, {pipeline_mode = #tpu.pipeline_mode<synchronous>, transform_indices = @transform_1, window_bounds = array<i64: 8, 256>}, {pipeline_mode = #tpu.pipeline_mode<synchronous>, transform_indices = @transform_2, window_bounds = array<i64: 1, 256>}, {pipeline_mode = #tpu.pipeline_mode<synchronous>, transform_indices = @transform_3, window_bounds = array<i64: 256, 128>}, {pipeline_mode = #tpu.pipeline_mode<synchronous>, transform_indices = @transform_4, window_bounds = array<i64: 1, 128>}, {transform_indices = @transform_5, window_bounds = array<i64: 8, 128>}]} {
    %c0 = arith.constant 0 : index
    %c0_0 = arith.constant 0 : index
    %0 = vector.load %arg1[%c0, %c0_0] : memref<8x8xf32, #tpu.memory_space<vmem>>, vector<8x8xf32>
    %c0_1 = arith.constant 0 : index
    %c0_2 = arith.constant 0 : index
    %1 = vector.load %arg2[%c0_1, %c0_2] : memref<8x256xf32, #tpu.memory_space<vmem>>, vector<8x256xf32>
    %cst = arith.constant dense<0.000000e+00> : vector<8x256xf32>
    %2 = tpu.matmul %0, %1, %cst {dimension_numbers = #tpu.dot_dimension_numbers<[1], [0], [0], [1], [0, 0, 1, 1], [], []>} : vector<8x8xf32>, vector<8x256xf32>, vector<8x256xf32> -> vector<8x256xf32>
    %c0_3 = arith.constant 0 : index
    %c0_4 = arith.constant 0 : index
    %3 = vector.load %arg3[%c0_3, %c0_4] : memref<1x256xf32, #tpu.memory_space<vmem>>, vector<1x256xf32>
    %4 = vector.broadcast %3 : vector<1x256xf32> to vector<8x256xf32>
    %5 = arith.addf %2, %4 : vector<8x256xf32>
    %cst_5 = arith.constant 0.000000e+00 : f32
    %6 = vector.broadcast %cst_5 : f32 to vector<8x256xf32>
    %7 = arith.maximumf %5, %6 : vector<8x256xf32>
    %c0_6 = arith.constant 0 : index
    %c0_7 = arith.constant 0 : index
    %8 = vector.load %arg4[%c0_6, %c0_7] : memref<256x128xf32, #tpu.memory_space<vmem>>, vector<256x128xf32>
    %cst_8 = arith.constant dense<0.000000e+00> : vector<8x128xf32>
    %9 = tpu.matmul %7, %8, %cst_8 {dimension_numbers = #tpu.dot_dimension_numbers<[1], [0], [0], [1], [0, 0, 1, 1], [], []>} : vector<8x256xf32>, vector<256x128xf32>, vector<8x128xf32> -> vector<8x128xf32>
    %c0_9 = arith.constant 0 : index
    %c0_10 = arith.constant 0 : index
    %10 = vector.load %arg5[%c0_9, %c0_10] : memref<1x128xf32, #tpu.memory_space<vmem>>, vector<1x128xf32>
    %11 = vector.broadcast %10 : vector<1x128xf32> to vector<8x128xf32>
    %12 = arith.addf %9, %11 : vector<8x128xf32>
    %c0_11 = arith.constant 0 : index
    %c0_12 = arith.constant 0 : index
    %13 = vector.load %arg6[%c0_11, %c0_12] : memref<8x128xf32, #tpu.memory_space<vmem>>, vector<8x128xf32>
    tpu.vector_store %arg6[%c0_11, %c0_12], %12 {strides = array<i32>} : memref<8x128xf32, #tpu.memory_space<vmem>>, vector<8x128xf32>,
    return
  }
  func.func @transform_0(%arg0: i32) -> (i32, i32) {
    %c0_i32 = arith.constant 0 : i32
    %c0_i32_0 = arith.constant 0 : i32
    return %arg0, %c0_i32 : i32, i32
  }
  func.func @transform_1(%arg0: i32) -> (i32, i32) {
    %c0_i32 = arith.constant 0 : i32
    %c0_i32_0 = arith.constant 0 : i32
    %c0_i32_1 = arith.constant 0 : i32
    return %c0_i32, %c0_i32_0 : i32, i32
  }
  func.func @transform_2(%arg0: i32) -> (i32, i32) {
    %c0_i32 = arith.constant 0 : i32
    %c0_i32_0 = arith.constant 0 : i32
    %c0_i32_1 = arith.constant 0 : i32
    return %c0_i32, %c0_i32_0 : i32, i32
  }
  func.func @transform_3(%arg0: i32) -> (i32, i32) {
    %c0_i32 = arith.constant 0 : i32
    %c0_i32_0 = arith.constant 0 : i32
    %c0_i32_1 = arith.constant 0 : i32
    return %c0_i32, %c0_i32_0 : i32, i32
  }
  func.func @transform_4(%arg0: i32) -> (i32, i32) {
    %c0_i32 = arith.constant 0 : i32
    %c0_i32_0 = arith.constant 0 : i32
    %c0_i32_1 = arith.constant 0 : i32
    return %c0_i32, %c0_i32_0 : i32, i32
  }
  func.func @transform_5(%arg0: i32) -> (i32, i32) {
    %c0_i32 = arith.constant 0 : i32
    %c0_i32_0 = arith.constant 0 : i32
    return %arg0, %c0_i32 : i32, i32
  }
}

</mosaic_0001>

<bundles_post_ra>
// kernel: actor_critic_forward.1
= control target key start
LH: loop header
LB: loop body
LE: loop exit
PB: predicated region body
PF: predicated region fallthrough
CT: control target
= control target key end

     0   :  { %10 = vsyncpa [#allocation3], 0  ;;  %s338_s0 = inlined_call_operand.hbm [shape: f32[8,8], index: 0, kind: input, shape index: {}]   ;;  %s339_s1 = inlined_call_operand.hbm [shape: f32[8,256], index: 1, kind: input, shape index: {}]   ;;  %s340_s2 = inlined_call_operand.vmem [shape: f32[1,256], index: 2, kind: input, shape index: {}]   ;;  %s341_s3 = inlined_call_operand.hbm [shape: f32[256,128], index: 3, kind: input, shape index: {}]   ;;  %s342_s4 = inlined_call_operand.vmem [shape: f32[1,128], index: 4, kind: input, shape index: {}]   ;;  %s343_s5 = inlined_call_operand.vmem [shape: f32[8,128], index: 5, kind: output, shape index: {}]  }
   0x1   :  { %11 = vsyncpa [#allocation5], 0  ;;  %s28_s20 = sshll.u32 %s339_s1, 4  ;;  %s285_s21 = smov [#allocation4]   ;;  %s29_s20 = int_to_ptr.hbm [resolvable:$true] %s28_s20 }
   0x2   :  { %s30_s22 = sshll.u32 %s285_s21, 4  ;;  %s17_s25 = sshll.u32 %s338_s0, 4  ;;  %s31_s22 = int_to_ptr.vmem [resolvable:$true] %s30_s22  ;;  %s18_s25 = int_to_ptr.hbm [resolvable:$true] %s17_s25 }
   0x3   :  { %33 = dma.hbm_to_vmem [thread:$0]  %s29_s20, 256, %s31_s22, [#allocation5]  }
   0x4   :  { %s286_s26 = smov [#allocation2]   ;;  %s40_s30 = sshll.u32 %s341_s3, 4  ;;  %s41_s30 = int_to_ptr.hbm [resolvable:$true] %s40_s30 }
   0x5   :  { %s19_s27 = sshll.u32 %s286_s26, 4  ;;  %s287_s1 = smov [#allocation6]   ;;  %s20_s27 = int_to_ptr.vmem [resolvable:$true] %s19_s27 }
   0x6   :  { %22 = dma.hbm_to_vmem [thread:$0]  %s18_s25, 128, %s20_s27, [#allocation3]  }
   0x7   :  { %s42_s6 = sshll.u32 %s287_s1, 4  ;;  %s288_s7 = smov 128   ;;  %s43_s6 = int_to_ptr.vmem [resolvable:$true] %s42_s6 }
   0x8   :  { %s289_s8 = smov 8  }
   0x9   :  { %48 = dma.hbm_to_vmem [thread:$0]  %s41_s30, 4096, %s43_s6, [#allocation5], %s288_s7, %s288_s7, %s289_s8  }
   0xa   :  { %281 = dma.done.wait [#allocation3], 128  }
   0xb   :  { %282 = vsyncadd [#allocation3], 4294967168 }
   0xc   :  { %283 = dma.done.wait [#allocation5], 4352  }
   0xd   :  { %284 = vsyncadd [#allocation5], 4294962944  ;;  %vm72_vm0 = vcmask 64512   ;;  %v64_v0 = vld [vmem:[#allocation4] sm:$0xff]  ;;  %v63_v1 = vld [vmem:[#allocation2] sm:$0xff] }
   0xe   :  { %v65_v2 = vld [vmem:[#allocation4 + $0x8] sm:$0xff]  ;;  %91 = vmatpush.msra.mxu0 %v64_v0  ;;  %v132_v5 = vld [vmem:[#allocation6 + $0x70] sm:$0xff]  ;;  %v131_v7 = vld [vmem:[#allocation6 + $0x68] sm:$0xff] }
   0xf   :  { %111 = vmatpush.msra.mxu1 %v65_v2  ;;  %v133_v3 = vld [vmem:[#allocation6 + $0x78] sm:$0xff]  ;;  %201 = vmatmul.msk.f32.vlgmr.msra.gmra.mxu0 %vm72_vm0, %v63_v1  ;;  %v148_v6 = vld [vmem:[#allocation6 + $0xf0] sm:$0xff]  ;;  %v147_v8 = vld [vmem:[#allocation6 + $0xe8] sm:$0xff] }
  0x10   :  { %v149_v4 = vld [vmem:[#allocation6 + $0xf8] sm:$0xff]  ;;  %202 = vmatmul.msk.f32.vlgmr.msra.gmra.mxu1 %vm72_vm0, %v63_v1  ;;  %154 = vmatpush.msra.mxu2 %v133_v3  ;;  %v130_v9 = vld [vmem:[#allocation6 + $0x60] sm:$0xff]  ;;  %v128_v13 = vld [vmem:[#allocation6 + $0x50] sm:$0xff] }
  0x11   :  { %174 = vmatpush.msra.mxu3 %v149_v4  ;;  %v146_v10 = vld [vmem:[#allocation6 + $0xe0] sm:$0xff]  ;;  %v129_v11 = vld [vmem:[#allocation6 + $0x58] sm:$0xff]  ;;  %v144_v14 = vld [vmem:[#allocation6 + $0xd0] sm:$0xff] }
  0x12   :  { %155 = vmatpush.msra.mxu2 %v132_v5  ;;  %v145_v12 = vld [vmem:[#allocation6 + $0xd8] sm:$0xff]  ;;  %v127_v15 = vld [vmem:[#allocation6 + $0x48] sm:$0xff]  ;;  %v126_v17 = vld [vmem:[#allocation6 + $0x40] sm:$0xff] }
  0x13   :  { %175 = vmatpush.msra.mxu3 %v148_v6  ;;  %v143_v16 = vld [vmem:[#allocation6 + $0xc8] sm:$0xff]  ;;  %v142_v18 = vld [vmem:[#allocation6 + $0xc0] sm:$0xff]  ;;  %v125_v19 = vld [vmem:[#allocation6 + $0x38] sm:$0xff] }
  0x14   :  { %156 = vmatpush.msra.mxu2 %v131_v7  ;;  %v141_v20 = vld [vmem:[#allocation6 + $0xb8] sm:$0xff]  ;;  %v124_v21 = vld [vmem:[#allocation6 + $0x30] sm:$0xff]  ;;  %v123_v23 = vld [vmem:[#allocation6 + $0x28] sm:$0xff] }
  0x15   :  { %176 = vmatpush.msra.mxu3 %v147_v8  ;;  %v140_v22 = vld [vmem:[#allocation6 + $0xb0] sm:$0xff]  ;;  %v139_v24 = vld [vmem:[#allocation6 + $0xa8] sm:$0xff]  ;;  %v122_v25 = vld [vmem:[#allocation6 + $0x20] sm:$0xff] }
  0x16   :  { %157 = vmatpush.msra.mxu2 %v130_v9  ;;  %v138_v26 = vld [vmem:[#allocation6 + $0xa0] sm:$0xff]  ;;  %v121_v27 = vld [vmem:[#allocation6 + $0x18] sm:$0xff]  ;;  %v120_v28 = vld [vmem:[#allocation6 + $0x10] sm:$0xff] }
  0x17   :  { %177 = vmatpush.msra.mxu3 %v146_v10  ;;  %v137_v29 = vld [vmem:[#allocation6 + $0x98] sm:$0xff]  ;;  %v119_v30 = vld [vmem:[#allocation6 + $0x8] sm:$0xff]  ;;  %v136_v31 = vld [vmem:[#allocation6 + $0x90] sm:$0xff] }
  0x18   :  { %158 = vmatpush.msra.mxu2 %v129_v11  ;;  %v118_v32 = vld [vmem:[#allocation6] sm:$0xff]  ;;  %v135_v33 = vld [vmem:[#allocation6 + $0x88] sm:$0xff] }
  0x19   :  { %178 = vmatpush.msra.mxu3 %v145_v12  ;;  %v134_v34 = vld [vmem:[#allocation6 + $0x80] sm:$0xff]  ;;  %v66_v35 = vld [vmem:[%s340_s2] sm:$0x3] }
  0x1a   :  { %159 = vmatpush.msra.mxu2 %v128_v13  ;;  %v68_v36 = vperm.slane %v66_v35, 0  ;;  %v69_v37 = vperm.slane %v66_v35, 1  ;;  %v208_v44 = vld [vmem:[%s342_s4] ss:$0 sm:$0xff] }
  0x1b   :  { %179 = vmatpush.msra.mxu3 %v144_v14 }
  0x1c   :  { %160 = vmatpush.msra.mxu2 %v127_v15 }
  0x1d   :  { %180 = vmatpush.msra.mxu3 %v143_v16 }
  0x1e   :  { %161 = vmatpush.msra.mxu2 %v126_v17 }
  0x1f   :  { %181 = vmatpush.msra.mxu3 %v142_v18 }
  0x20   :  { %162 = vmatpush.msra.mxu2 %v125_v19 }
  0x21   :  { %182 = vmatpush.msra.mxu3 %v141_v20 }
  0x22   :  { %163 = vmatpush.msra.mxu2 %v124_v21 }
  0x23   :  { %183 = vmatpush.msra.mxu3 %v140_v22 }
  0x24   :  { %164 = vmatpush.msra.mxu2 %v123_v23 }
  0x25   :  { %184 = vmatpush.msra.mxu3 %v139_v24 }
  0x26   :  { %165 = vmatpush.msra.mxu2 %v122_v25 }
  0x27   :  { %185 = vmatpush.msra.mxu3 %v138_v26 }
  0x28   :  { %166 = vmatpush.msra.mxu2 %v121_v27 }
  0x29   :  { %186 = vmatpush.msra.mxu3 %v137_v29 }
  0x2a   :  { %167 = vmatpush.msra.mxu2 %v120_v28 }
  0x2b   :  { %187 = vmatpush.msra.mxu3 %v136_v31 }
  0x2c   :  { %168 = vmatpush.msra.mxu2 %v119_v30 }
  0x2d   :  { %188 = vmatpush.msra.mxu3 %v135_v33 }
  0x2e   :  { %169 = vmatpush.msra.mxu2 %v118_v32 }
  0x2f   :  { %189 = vmatpush.msra.mxu3 %v134_v34 }
  0x8c   :  { %v93_v38 = vpop.f32.mrf.mxu0 }
  0x8d   :  { %v113_v39 = vpop.f32.mrf.mxu1  ;;  %v94_v40 = vadd.f32 %v93_v38, %v68_v36 }
  0x8e   :  { %v114_v41 = vadd.f32 %v113_v39, %v69_v37 }
  0x8f   :  { %v116_v42 = vmax.f32 %v94_v40, 0.0 }
  0x90   :  { %v117_v43 = vmax.f32 %v114_v41, 0.0 }
  0x91   :  { %170 = vmatmul.f32.vlgmr.msra.gmra.mxu2 %v116_v42 }
  0x92   :  { %190 = vmatmul.f32.vlgmr.msra.gmra.mxu3 %v117_v43 }
 0x114   :  { %v171_v45 = vpop.f32.mrf.mxu2 }
 0x115   :  { %v191_v46 = vpop.f32.mrf.mxu3  ;;  %v172_v47 = vadd.f32 %v208_v44, %v171_v45 }
 0x117   :  { %v192_v48 = vadd.f32 %v191_v46, %v172_v47 }
 0x119   :  { %194 = vst [vmem:[%s343_s5] sm:$0xff] %v192_v48 }
 0x11a   :  { %199 = vsyncpa [#allocation3], 1 }
 0x11b   :  { %200 = vsyncpa [#allocation5], 1 }

</bundles_post_ra>
